<compile_context>
chip_gen: v6e
topology: v6e:2x2x1
jax: 0.10.0
libtpu: 0.0.40
codegen_flags: <defaults>
</compile_context>

<pallas_src>
import functools

import jax
import jax.numpy as jnp
from jax import lax
from jax.experimental import pallas as pl
from jax.experimental.pallas import tpu as pltpu


def tiny_ae_kernel(x_ref, w_ref, bh_ref, br_ref, out_ref):
    """One batch-tile of the tied-weight autoencoder.

    x_ref  : [TB, F]      input tile
    w_ref  : [F, Hpad]    shared encoder/decoder weight (hidden dim zero-padded)
    bh_ref : [1, Hpad]    hidden bias (zero-padded)
    br_ref : [1, F]       reconstruction bias
    out_ref: [TB, F]      reconstructed output tile
    """
    x = x_ref[...]
    w = w_ref[...]

    # Encoder: hidden = tanh(x @ W + b_h)   -> MXU matmul + EUP tanh
    hidden = jnp.tanh(
        jnp.dot(x, w, preferred_element_type=jnp.float32) + bh_ref[...]
    )

    # Decoder (tied weights): out = sigmoid(hidden @ W.T + b_r)
    # Contract hidden's lane axis against W's hidden axis directly — no
    # in-kernel transpose of W.
    recon = (
        lax.dot_general(
            hidden,
            w,
            dimension_numbers=(((1,), (1,)), ((), ())),
            preferred_element_type=jnp.float32,
        )
        + br_ref[...]
    )
    out_ref[...] = jax.nn.sigmoid(recon).astype(out_ref.dtype)


@functools.partial(jax.jit, static_argnames=("batch_tile",))
def tiny_autoencoder_forward(x, w, hidden_bias, reconstruct_bias, *, batch_tile=None):
    B, F = x.shape
    _, H = w.shape

    # Default tiling: single block for small batches; 256-row tiles (MXU M
    # dimension on v6e/v7x) once the batch is large enough to warrant a grid.
    if batch_tile is None:
        batch_tile = B if B <= 256 else 256
    assert B % batch_tile == 0, "batch must be divisible by batch_tile"

    # Zero-pad the hidden dimension to a full lane width (multiple of 128).
    # tanh(x @ 0 + 0) = 0, so padded hidden columns contribute exactly 0 to
    # the decoder matmul — numerically identical to the unpadded model.
    H_pad = ((H + 127) // 128) * 128
    if H_pad != H:
        w = jnp.pad(w, ((0, 0), (0, H_pad - H)))
        hidden_bias = jnp.pad(hidden_bias, (0, H_pad - H))

    bh = hidden_bias.reshape(1, H_pad)
    br = reconstruct_bias.reshape(1, F)

    grid = (B // batch_tile,)

    return pl.pallas_call(
        tiny_ae_kernel,
        out_shape=jax.ShapeDtypeStruct((B, F), x.dtype),
        grid_spec=pltpu.PrefetchScalarGridSpec(
            num_scalar_prefetch=0,
            grid=grid,
            in_specs=[
                # batch tile of the input
                pl.BlockSpec((batch_tile, F), lambda i: (i, 0)),
                # weight / biases: constant index_map -> DMA'd once, resident
                pl.BlockSpec((F, H_pad), lambda i: (0, 0)),
                pl.BlockSpec((1, H_pad), lambda i: (0, 0)),
                pl.BlockSpec((1, F), lambda i: (0, 0)),
            ],
            out_specs=pl.BlockSpec((batch_tile, F), lambda i: (i, 0)),
        ),
        compiler_params=pltpu.CompilerParams(
            dimension_semantics=("parallel",)
        ),
    )(x, w, bh, br)


def reference_forward(x, w, hidden_bias, reconstruct_bias):
    """Pure-JAX reference matching the PyTorch forward (eval mode)."""
    hidden = jnp.tanh(x @ w + hidden_bias)
    return jax.nn.sigmoid(hidden @ w.T + reconstruct_bias)


if __name__ == "__main__":
    # Module hyper-parameters (synthetic, deterministic init).
    in_features = 128
    compression_rate = 0.6
    hidden_units = int(in_features * (1.0 - compression_rate))  # == 51

    batch = 16

    key = jax.random.PRNGKey(0)
    kx, kw = jax.random.split(key)

    # Inputs must be in [0, 1] per the module docstring.
    x = jax.random.uniform(kx, (batch, in_features), dtype=jnp.float32)

    # w ~ U(-1/in_features, 1/in_features), biases zero — matches __init__.
    w = jax.random.uniform(
        kw,
        (in_features, hidden_units),
        minval=-1.0 / in_features,
        maxval=1.0 / in_features,
        dtype=jnp.float32,
    )
    hidden_bias = jnp.zeros((hidden_units,), dtype=jnp.float32)
    reconstruct_bias = jnp.zeros((in_features,), dtype=jnp.float32)

    out = tiny_autoencoder_forward(x, w, hidden_bias, reconstruct_bias)
    out = jax.block_until_ready(out)

    ref = reference_forward(x, w, hidden_bias, reconstruct_bias)
    assert out.shape == (batch, in_features)
    assert jnp.allclose(out, ref, atol=1e-5, rtol=1e-5), "mismatch vs reference"

    print("KERNEL_OK")
</pallas_src>

<mosaic_0001>
module attributes {stable_mosaic.version = 11 : i64} {
  func.func @tiny_ae_kernel(%arg0: i32, %arg1: memref<16x128xf32, #tpu.memory_space<vmem>>, %arg2: memref<128x128xf32, #tpu.memory_space<vmem>>, %arg3: memref<1x128xf32, #tpu.memory_space<vmem>>, %arg4: memref<1x128xf32, #tpu.memory_space<vmem>>, %arg5: memref<16x128xf32, #tpu.memory_space<vmem>>) attributes {dimension_semantics = [#tpu.dimension_semantics<parallel>], iteration_bounds = array<i64: 1>, scalar_prefetch = 0 : i64, scratch_operands = 0 : i64, tpu.core_type = #tpu.core_type<tc>, window_params = [{transform_indices = @transform_0, window_bounds = array<i64: 16, 128>}, {pipeline_mode = #tpu.pipeline_mode<synchronous>, transform_indices = @transform_1, window_bounds = array<i64: 128, 128>}, {pipeline_mode = #tpu.pipeline_mode<synchronous>, transform_indices = @transform_2, window_bounds = array<i64: 1, 128>}, {pipeline_mode = #tpu.pipeline_mode<synchronous>, transform_indices = @transform_3, window_bounds = array<i64: 1, 128>}, {transform_indices = @transform_4, window_bounds = array<i64: 16, 128>}]} {
    %c0 = arith.constant 0 : index
    %c0_0 = arith.constant 0 : index
    %0 = vector.load %arg1[%c0, %c0_0] : memref<16x128xf32, #tpu.memory_space<vmem>>, vector<16x128xf32>
    %c0_1 = arith.constant 0 : index
    %c0_2 = arith.constant 0 : index
    %1 = vector.load %arg2[%c0_1, %c0_2] : memref<128x128xf32, #tpu.memory_space<vmem>>, vector<128x128xf32>
    %cst = arith.constant dense<0.000000e+00> : vector<16x128xf32>
    %2 = tpu.matmul %0, %1, %cst {dimension_numbers = #tpu.dot_dimension_numbers<[1], [0], [0], [1], [0, 0, 1, 1], [], []>} : vector<16x128xf32>, vector<128x128xf32>, vector<16x128xf32> -> vector<16x128xf32>
    %c0_3 = arith.constant 0 : index
    %c0_4 = arith.constant 0 : index
    %3 = vector.load %arg3[%c0_3, %c0_4] : memref<1x128xf32, #tpu.memory_space<vmem>>, vector<1x128xf32>
    %4 = vector.broadcast %3 : vector<1x128xf32> to vector<16x128xf32>
    %5 = arith.addf %2, %4 : vector<16x128xf32>
    %6 = math.tanh %5 : vector<16x128xf32>
    %cst_5 = arith.constant dense<0.000000e+00> : vector<16x128xf32>
    %7 = tpu.matmul %6, %1, %cst_5 {dimension_numbers = #tpu.dot_dimension_numbers<[1], [1], [0], [0], [0, 0, 1, 0], [], []>} : vector<16x128xf32>, vector<128x128xf32>, vector<16x128xf32> -> vector<16x128xf32>
    %c0_6 = arith.constant 0 : index
    %c0_7 = arith.constant 0 : index
    %8 = vector.load %arg4[%c0_6, %c0_7] : memref<1x128xf32, #tpu.memory_space<vmem>>, vector<1x128xf32>
    %9 = vector.broadcast %8 : vector<1x128xf32> to vector<16x128xf32>
    %10 = arith.addf %7, %9 : vector<16x128xf32>
    %11 = arith.negf %10 : vector<16x128xf32>
    %12 = math.exp %11 : vector<16x128xf32>
    %cst_8 = arith.constant 1.000000e+00 : f32
    %13 = vector.broadcast %cst_8 : f32 to vector<16x128xf32>
    %14 = arith.addf %13, %12 : vector<16x128xf32>
    %15 = arith.divf %13, %14 : vector<16x128xf32>
    %c0_9 = arith.constant 0 : index
    %c0_10 = arith.constant 0 : index
    %16 = vector.load %arg5[%c0_9, %c0_10] : memref<16x128xf32, #tpu.memory_space<vmem>>, vector<16x128xf32>
    tpu.vector_store %arg5[%c0_9, %c0_10], %15 {strides = array<i32>} : memref<16x128xf32, #tpu.memory_space<vmem>>, vector<16x128xf32>,
    return
  }
  func.func @transform_0(%arg0: i32) -> (i32, i32) {
    %c0_i32 = arith.constant 0 : i32
    %c0_i32_0 = arith.constant 0 : i32
    return %arg0, %c0_i32 : i32, i32
  }
  func.func @transform_1(%arg0: i32) -> (i32, i32) {
    %c0_i32 = arith.constant 0 : i32
    %c0_i32_0 = arith.constant 0 : i32
    %c0_i32_1 = arith.constant 0 : i32
    return %c0_i32, %c0_i32_0 : i32, i32
  }
  func.func @transform_2(%arg0: i32) -> (i32, i32) {
    %c0_i32 = arith.constant 0 : i32
    %c0_i32_0 = arith.constant 0 : i32
    %c0_i32_1 = arith.constant 0 : i32
    return %c0_i32, %c0_i32_0 : i32, i32
  }
  func.func @transform_3(%arg0: i32) -> (i32, i32) {
    %c0_i32 = arith.constant 0 : i32
    %c0_i32_0 = arith.constant 0 : i32
    %c0_i32_1 = arith.constant 0 : i32
    return %c0_i32, %c0_i32_0 : i32, i32
  }
  func.func @transform_4(%arg0: i32) -> (i32, i32) {
    %c0_i32 = arith.constant 0 : i32
    %c0_i32_0 = arith.constant 0 : i32
    return %arg0, %c0_i32 : i32, i32
  }
}

</mosaic_0001>

<bundles_post_ra>
// kernel: tiny_autoencoder_forward.1
= control target key start
LH: loop header
LB: loop body
LE: loop exit
PB: predicated region body
PF: predicated region fallthrough
CT: control target
= control target key end

     0   :  { %s470_s0 = inlined_call_operand.vmem [shape: f32[16,128], index: 0, kind: input, shape index: {}]   ;;  %s471_s1 = inlined_call_operand.vmem [shape: f32[128,128], index: 1, kind: input, shape index: {}]   ;;  %s472_s2 = inlined_call_operand.vmem [shape: f32[1,128], index: 2, kind: input, shape index: {}]   ;;  %s473_s3 = inlined_call_operand.vmem [shape: f32[1,128], index: 3, kind: input, shape index: {}]   ;;  %s474_s4 = inlined_call_operand.hbm [shape: f32[16,128], index: 4, kind: output, shape index: {}]  }
   0x1   :  { %v35_v0 = vld [vmem:[%s471_s1 + $0x78] sm:$0xff]  ;;  %v34_v1 = vld [vmem:[%s471_s1 + $0x70] sm:$0xff]  ;;  %v33_v2 = vld [vmem:[%s471_s1 + $0x68] sm:$0xff] }
   0x2   :  { %272 = vmatprep.subr.mxu0 %v35_v0  ;;  %307 = vmatprep.subr.mxu1 %v35_v0  ;;  %v32_v3 = vld [vmem:[%s471_s1 + $0x60] sm:$0xff]  ;;  %v31_v5 = vld [vmem:[%s471_s1 + $0x58] sm:$0xff] }
   0x3   :  { %273 = vmatpush3.msra.mxu0 %v35_v0  ;;  %308 = vmatpush3.xpose.msra.mxu1 %v35_v0  ;;  %v18_v4 = vld [vmem:[%s470_s0] sm:$0xff] }
   0x4   :  { %274 = vmatprep.subr.mxu0 %v34_v1  ;;  %309 = vmatprep.subr.mxu1 %v34_v1 }
   0x5   :  { %275 = vmatpush3.msra.mxu0 %v34_v1  ;;  %304 = vmatprep.mubr.f32.mxu0 %v18_v4 }
   0x6   :  { %276 = vmatprep.subr.mxu0 %v33_v2 }
   0x7   :  { %277 = vmatpush3.msra.mxu0 %v33_v2 }
   0x8   :  { %9 = vsyncpa [#allocation3], 0  ;;  %278 = vmatprep.subr.mxu0 %v32_v3  ;;  %310 = vmatpush3.xpose.msra.mxu1 %v34_v1  ;;  %v30_v6 = vld [vmem:[%s471_s1 + $0x50] sm:$0xff]  ;;  %v29_v7 = vld [vmem:[%s471_s1 + $0x48] sm:$0xff] }
   0x9   :  { %279 = vmatpush3.msra.mxu0 %v32_v3  ;;  %311 = vmatprep.subr.mxu1 %v33_v2  ;;  %v28_v8 = vld [vmem:[%s471_s1 + $0x40] sm:$0xff]  ;;  %v27_v9 = vld [vmem:[%s471_s1 + $0x38] sm:$0xff]  ;;  %v26_v10 = vld [vmem:[%s471_s1 + $0x30] sm:$0xff] }
   0xa   :  { %280 = vmatprep.subr.mxu0 %v31_v5  ;;  %v25_v11 = vld [vmem:[%s471_s1 + $0x28] sm:$0xff]  ;;  %v24_v12 = vld [vmem:[%s471_s1 + $0x20] sm:$0xff]  ;;  %v23_v13 = vld [vmem:[%s471_s1 + $0x18] sm:$0xff] }
   0xb   :  { %281 = vmatpush3.msra.mxu0 %v31_v5  ;;  %v22_v14 = vld [vmem:[%s471_s1 + $0x10] sm:$0xff]  ;;  %v21_v15 = vld [vmem:[%s471_s1 + $0x8] sm:$0xff]  ;;  %v20_v16 = vld [vmem:[%s471_s1] sm:$0xff] }
   0xc   :  { %282 = vmatprep.subr.mxu0 %v30_v6  ;;  %312 = vmatpush3.xpose.msra.mxu1 %v33_v2  ;;  %v19_v17 = vld [vmem:[%s470_s0 + $0x8] sm:$0xff]  ;;  %v232_v18 = vld [vmem:[%s472_s2] ss:$0 sm:$0xff]  ;;  %s379_s2 = smov [#allocation2]  }
   0xd   :  { %283 = vmatpush3.msra.mxu0 %v30_v6  ;;  %313 = vmatprep.subr.mxu1 %v32_v3  ;;  %v233_v25 = vld [vmem:[%s473_s3] ss:$0 sm:$0xff]  ;;  %s221_s27 = sshll.u32 %s379_s2, 4  ;;  %s222_s27 = int_to_ptr.vmem [resolvable:$true] %s221_s27 }
   0xe   :  { %284 = vmatprep.subr.mxu0 %v29_v7  ;;  %s357_s3 = scalar_lea.vmem %s222_s27, 256  ;;  %p362_p1 = scmp.lt.s32.totalorder %s222_s27, %s222_s27 }
   0xf   :  { %285 = vmatpush3.msra.mxu0 %v29_v7  ;;  %p358_p0 = scmp.ne.s32.totalorder %s222_s27, %s357_s3  ;;  %p363_p2 = scmp.lt.s32.totalorder %s357_s3, %s357_s3 }
  0x10   :  { %286 = vmatprep.subr.mxu0 %v28_v8  ;;  %314 = vmatpush3.xpose.msra.mxu1 %v32_v3 }
  0x11   :  { %287 = vmatpush3.msra.mxu0 %v28_v8  ;;  %315 = vmatprep.subr.mxu1 %v31_v5  ;;  %p364_p3 = por %p363_p2, %p362_p1 }
  0x12   :  { %288 = vmatprep.subr.mxu0 %v27_v9 }
  0x13   :  { %289 = vmatpush3.msra.mxu0 %v27_v9  ;;  %p365_p4 = pnand %p364_p3, %p358_p0 }
  0x14   :  { %290 = vmatprep.subr.mxu0 %v26_v10  ;;  %316 = vmatpush3.xpose.msra.mxu1 %v31_v5 }
  0x15   :  { %291 = vmatpush3.msra.mxu0 %v26_v10  ;;  %317 = vmatprep.subr.mxu1 %v30_v6 }
  0x16   :  { %292 = vmatprep.subr.mxu0 %v25_v11 }
  0x17   :  { %293 = vmatpush3.msra.mxu0 %v25_v11 }
  0x18   :  { %294 = vmatprep.subr.mxu0 %v24_v12  ;;  %318 = vmatpush3.xpose.msra.mxu1 %v30_v6 }
  0x19   :  { %295 = vmatpush3.msra.mxu0 %v24_v12  ;;  %319 = vmatprep.subr.mxu1 %v29_v7 }
  0x1a   :  { %296 = vmatprep.subr.mxu0 %v23_v13 }
  0x1b   :  { %297 = vmatpush3.msra.mxu0 %v23_v13 }
  0x1c   :  { %298 = vmatprep.subr.mxu0 %v22_v14  ;;  %320 = vmatpush3.xpose.msra.mxu1 %v29_v7 }
  0x1d   :  { %299 = vmatpush3.msra.mxu0 %v22_v14  ;;  %321 = vmatprep.subr.mxu1 %v28_v8 }
  0x1e   :  { %300 = vmatprep.subr.mxu0 %v21_v15 }
  0x1f   :  { %301 = vmatpush3.msra.mxu0 %v21_v15 }
  0x20   :  { %302 = vmatprep.subr.mxu0 %v20_v16  ;;  %322 = vmatpush3.xpose.msra.mxu1 %v28_v8 }
  0x21   :  { %303 = vmatpush3.msra.mxu0 %v20_v16  ;;  %323 = vmatprep.subr.mxu1 %v27_v9 }
  0x22   :  { %305 = vmatmul.mubr.f32.vlgmr.msra.gmra.mxu0 %v19_v17 }
  0x24   :  { %324 = vmatpush3.xpose.msra.mxu1 %v27_v9 }
  0x25   :  { %325 = vmatprep.subr.mxu1 %v26_v10 }
  0x28   :  { %326 = vmatpush3.xpose.msra.mxu1 %v26_v10 }
  0x29   :  { %327 = vmatprep.subr.mxu1 %v25_v11 }
  0x2c   :  { %328 = vmatpush3.xpose.msra.mxu1 %v25_v11 }
  0x2d   :  { %329 = vmatprep.subr.mxu1 %v24_v12 }
  0x30   :  { %330 = vmatpush3.xpose.msra.mxu1 %v24_v12 }
  0x31   :  { %331 = vmatprep.subr.mxu1 %v23_v13 }
  0x34   :  { %332 = vmatpush3.xpose.msra.mxu1 %v23_v13 }
  0x35   :  { %333 = vmatprep.subr.mxu1 %v22_v14 }
  0x38   :  { %334 = vmatpush3.xpose.msra.mxu1 %v22_v14 }
  0x39   :  { %335 = vmatprep.subr.mxu1 %v21_v15 }
  0x3c   :  { %336 = vmatpush3.xpose.msra.mxu1 %v21_v15 }
  0x3d   :  { %337 = vmatprep.subr.mxu1 %v20_v16 }
  0x40   :  { %338 = vmatpush3.xpose.msra.mxu1 %v20_v16 }
  0xe2   :  { %v306_v19 = vpop.f32.mrf.mxu0 }
  0xe3   :  { %v115_v20 = vadd.f32 %v306_v19, %v232_v18 }
  0xe4   :  { %v109_v21 = vpop.f32.mrf.mxu0 }
  0xe5   :  { %v110_v22 = vadd.f32 %v232_v18, %v109_v21 }
  0xe7   :  { %345 = vtanh.f32 %v110_v22 }
  0xe8   :  { %347 = vtanh.f32 %v115_v20 }
  0xf4   :  { %v346_v23 = vpop.eup %345 }
  0xf5   :  { %v348_v24 = vpop.eup %347  ;;  %339 = vmatprep.mubr.f32.mxu1 %v346_v23 }
  0xf6   :  { %340 = vmatmul.mubr.f32.vlgmr.msra.gmra.mxu1 %v348_v24 }
 0x1b6   :  { %v341_v26 = vpop.f32.mrf.mxu1 }
 0x1b7   :  { %v199_v27 = vadd.f32 %v341_v26, %v233_v25 }
 0x1b8   :  { %v193_v28 = vpop.f32.mrf.mxu1 }
 0x1b9   :  { %v235_v29 = vmul.f32 -1.442695, %v199_v27  ;;  %v194_v30 = vadd.f32 %v233_v25, %v193_v28 }
 0x1bb   :  { %349 = vpow2.f32 %v235_v29  ;;  %v234_v31 = vmul.f32 -1.442695, %v194_v30 }
 0x1bd   :  { %351 = vpow2.f32 %v234_v31 }
 0x1c8   :  { %v350_v32 = vpop.eup %349 }
 0x1c9   :  { %v209_v33 = vadd.f32 1.0, %v350_v32 }
 0x1ca   :  { %v352_v34 = vpop.eup %351 }
 0x1cb   :  { %353 = vrcp.f32 %v209_v33  ;;  %v208_v35 = vadd.f32 1.0, %v352_v34 }
 0x1cd   :  { %355 = vrcp.f32 %v208_v35 }
 0x1d8   :  { %v354_v36 = vpop.eup %353 }
 0x1d9   :  { %215 = vst [vmem:[#allocation2 + $0x8] sm:$0xff] %v354_v36 }
 0x1da   :  { %v356_v37 = vpop.eup %355 }
 0x1db   :  { %214 = vst [vmem:[#allocation2] sm:$0xff] %v356_v37 }
 0x1dc   :  { %368 = shalt.err (!%p365_p4)
}
 0x1dd   :  { %s380_s28 = smov 128   ;;  %s381_s29 = smov 8  }
 0x1de   :  { %227 = dma.vmem_to_hbm [thread:$0]  %s222_s27, 256, %s474_s4, [#allocation3], %s380_s28, %s380_s28, %s381_s29  }
 0x1df   :  { %377 = dma.done.wait [#allocation3], 256  }
 0x1e0   :  { %378 = vsyncadd [#allocation3], 4294967040 }
 0x1e1   :  { %231 = vsyncpa [#allocation3], 1 }

</bundles_post_ra>
